<compile_context>
chip_gen: v5e
topology: v5e:2x2
jax: 0.10.0
libtpu: 0.0.40
codegen_flags: <defaults>
</compile_context>

<pallas_src>
import jax
import jax.numpy as jnp
from jax.experimental import pallas as pl
from jax.experimental.pallas import tpu as pltpu


LANES = 128
# 1024 rows x 128 lanes x 4 B (f32) = 512 KiB per block; input + output,
# double-buffered, is ~2 MiB of VMEM — fits every generation's scoped default
# while amortizing the ~0.35 us per-grid-step pipeline overhead.
_TARGET_TILE_ROWS = 1024


def _copy_kernel(x_ref, o_ref):
    # Identity elementwise copy of the current (tile_rows, 128) block.
    o_ref[...] = x_ref[...]


def _sublane_multiple(dtype):
    itemsize = jnp.dtype(dtype).itemsize
    if itemsize >= 4:
        return 8
    if itemsize == 2:
        return 16
    return 32


def view_pallas(x, *shape):
    """Reproduces torch.Tensor.view(*shape) semantics.

    The element-order-preserving copy runs as a Pallas TPU kernel on a
    lane-dense, sublane-aligned 2D flattening; the reshape itself is
    metadata-only glue.
    """
    total = x.size

    # Resolve a single -1 in the target shape (torch.view semantics).
    shape = list(shape)
    if shape.count(-1) > 1:
        raise ValueError("only one dimension can be inferred")
    if -1 in shape:
        known = 1
        for s in shape:
            if s != -1:
                known *= s
        if known == 0 or total % known != 0:
            raise ValueError(f"shape {shape} is invalid for input of size {total}")
        shape[shape.index(-1)] = total // known
    prod = 1
    for s in shape:
        prod *= s
    if prod != total:
        raise ValueError(f"shape {shape} is invalid for input of size {total}")

    if total == 0:
        # Zero-size tensor: nothing to copy.
        return jnp.reshape(x, tuple(shape))

    # Flatten row-major (matches PyTorch contiguous ordering).
    flat = jnp.reshape(x, (-1,))

    # --- choose a sublane-aligned, VMEM-budgeted tiling -------------------
    sub = _sublane_multiple(x.dtype)          # 8 (f32) / 16 (bf16) / 32 (i8)
    rows_needed = pl.cdiv(total, LANES)
    if rows_needed <= _TARGET_TILE_ROWS:
        # Small input: one tile, rounded up to a full sublane multiple.
        tile_rows = max(sub, pl.cdiv(rows_needed, sub) * sub)
        padded_rows = tile_rows
    else:
        tile_rows = _TARGET_TILE_ROWS         # multiple of 8, 16 and 32
        padded_rows = pl.cdiv(rows_needed, tile_rows) * tile_rows
    padded_total = padded_rows * LANES

    # Pad the tail (JAX glue) so the kernel only ever sees aligned tiles.
    if padded_total != total:
        flat = jnp.pad(flat, (0, padded_total - total))
    slab = jnp.reshape(flat, (padded_rows, LANES))

    itemsize = jnp.dtype(x.dtype).itemsize
    out2d = pl.pallas_call(
        _copy_kernel,
        out_shape=jax.ShapeDtypeStruct((padded_rows, LANES), x.dtype),
        grid_spec=pl.GridSpec(
            grid=(padded_rows // tile_rows,),
            in_specs=[pl.BlockSpec((tile_rows, LANES), lambda i: (i, 0))],
            out_specs=pl.BlockSpec((tile_rows, LANES), lambda i: (i, 0)),
        ),
        compiler_params=pltpu.CompilerParams(
            dimension_semantics=("parallel",),   # shards rows across v7x's 2 TCs
        ),
        # The copy is value-preserving, so donating the (temporary) slab buffer
        # is safe and halves HBM footprint.
        input_output_aliases={0: 0},
        cost_estimate=pl.CostEstimate(
            flops=0,
            transcendentals=0,
            bytes_accessed=2 * padded_total * itemsize,
        ),
    )(slab)

    flat_out = jnp.reshape(out2d, (-1,))
    if padded_total != total:
        flat_out = flat_out[:total]
    return jnp.reshape(flat_out, tuple(shape))


class ViewPallas:
    """Mirror of the PyTorch `View` module."""

    def __init__(self, *shape):
        self.shape = shape

    def __call__(self, x):
        return view_pallas(x, *self.shape)


if __name__ == "__main__":
    key = jax.random.PRNGKey(0)
    # NCHW input, as the PyTorch conv convention implies: (N=2, C=4, H=16, W=16)
    x = jax.random.normal(key, (2, 4, 16, 16), dtype=jnp.float32)

    # Typical usage: View(batch, -1) flatten after a conv stack.
    mod = ViewPallas(2, -1)
    y = jax.block_until_ready(mod(x))
    ref = jnp.reshape(x, (2, -1))
    assert y.shape == (2, 4 * 16 * 16), y.shape
    assert y.dtype == x.dtype
    assert bool(jnp.all(y == ref))

    # Non-flatten view with a VALID element count: 2*4*16*16 = 2048 = 8*16*16.
    y2 = jax.block_until_ready(ViewPallas(8, 16, 16)(x))
    assert y2.shape == (8, 16, 16)
    assert bool(jnp.all(y2 == jnp.reshape(x, (8, 16, 16))))

    # Ragged size (105 elements, not a multiple of 128) exercises the
    # pad-and-slice path instead of the old single-block fallback.
    x3 = jax.random.normal(jax.random.PRNGKey(0), (3, 5, 7), dtype=jnp.float32)
    y3 = jax.block_until_ready(ViewPallas(7, -1)(x3))
    assert y3.shape == (7, 15)
    assert bool(jnp.all(y3 == jnp.reshape(x3, (7, 15))))

    # bf16 path (16-row sublane multiple).
    x4 = x.astype(jnp.bfloat16)
    y4 = jax.block_until_ready(ViewPallas(-1)(x4))
    assert y4.shape == (2048,)
    assert bool(jnp.all(y4 == jnp.reshape(x4, (2048,))))

    print("KERNEL_OK")
</pallas_src>

<mosaic_0001>
module attributes {stable_mosaic.version = 11 : i64} {
  func.func @_copy_kernel(%arg0: i32, %arg1: memref<16x128xf32, #tpu.memory_space<vmem>>, %arg2: memref<16x128xf32, #tpu.memory_space<vmem>>) attributes {dimension_semantics = [#tpu.dimension_semantics<parallel>], iteration_bounds = array<i64: 1>, scalar_prefetch = 0 : i64, scratch_operands = 0 : i64, tpu.core_type = #tpu.core_type<tc>, window_params = [{transform_indices = @transform_0, window_bounds = array<i64: 16, 128>}, {transform_indices = @transform_1, window_bounds = array<i64: 16, 128>}]} {
    %c0 = arith.constant 0 : index
    %c0_0 = arith.constant 0 : index
    %0 = vector.load %arg1[%c0, %c0_0] : memref<16x128xf32, #tpu.memory_space<vmem>>, vector<16x128xf32>
    %c0_1 = arith.constant 0 : index
    %c0_2 = arith.constant 0 : index
    %1 = vector.load %arg2[%c0_1, %c0_2] : memref<16x128xf32, #tpu.memory_space<vmem>>, vector<16x128xf32>
    tpu.vector_store %arg2[%c0_1, %c0_2], %0 {strides = array<i32>} : memref<16x128xf32, #tpu.memory_space<vmem>>, vector<16x128xf32>,
    return
  }
  func.func @transform_0(%arg0: i32) -> (i32, i32) {
    %c0_i32 = arith.constant 0 : i32
    %c0_i32_0 = arith.constant 0 : i32
    return %arg0, %c0_i32 : i32, i32
  }
  func.func @transform_1(%arg0: i32) -> (i32, i32) {
    %c0_i32 = arith.constant 0 : i32
    %c0_i32_0 = arith.constant 0 : i32
    return %arg0, %c0_i32 : i32, i32
  }
}

</mosaic_0001>

<bundles_post_ra>
// kernel: tpu_custom_call.1
= control target key start
LH: loop header
LB: loop body
LE: loop exit
PB: predicated region body
PF: predicated region fallthrough
CT: control target
= control target key end

     0   :  { %6 = vsyncpa [#allocation3], 0  ;;  %s124_s0 = inlined_call_operand.hbm [shape: f32[16,128], index: 0, kind: input, shape index: {}, may-alias: {0,1}]   ;;  %s125_s1 = inlined_call_operand.hbm [shape: f32[16,128], index: 1, kind: output, shape index: {}, may-alias: {0,1}]  }
   0x1   :  { %7 = vsyncpa [#allocation4], 0  ;;  %s12_s8 = sshll.u32 %s124_s0, 4  ;;  %s104_s9 = smov [#allocation2]   ;;  %s13_s8 = int_to_ptr.hbm [resolvable:$true] %s12_s8 }
   0x2   :  { %s14_s10 = sshll.u32 %s104_s9, 4  ;;  %s105_s11 = smov 128   ;;  %s15_s10 = int_to_ptr.vmem [resolvable:$true] %s14_s10 }
   0x3   :  { %s106_s12 = smov 8  }
   0x4   :  { %20 = dma.hbm_to_vmem [thread:$0]  %s13_s8, 256, %s15_s10, [#allocation3], %s105_s11, %s105_s11, %s106_s12  }
   0x5   :  { %100 = dma.done.wait [#allocation3], 256  }
   0x6   :  { %101 = vsyncadd [#allocation3], 4294967040  ;;  %s107_s13 = smov [#allocation5]   ;;  %s35_s17 = sshll.u32 %s125_s1, 4  ;;  %v25_v0 = vld [vmem:[#allocation2] sm:$0xff]  ;;  %v26_v1 = vld [vmem:[#allocation2 + $0x8] sm:$0xff]  ;;  %s36_s17 = int_to_ptr.hbm [resolvable:$true] %s35_s17 }
   0x7   :  { %s33_s14 = sshll.u32 %s107_s13, 4  ;;  %27 = vst [vmem:[#allocation5] sm:$0xff] %v25_v0  ;;  %s34_s14 = int_to_ptr.vmem [resolvable:$true] %s33_s14 }
   0x8   :  { %28 = vst [vmem:[#allocation5 + $0x8] sm:$0xff] %v26_v1 }
   0x9   :  { %41 = dma.vmem_to_hbm [thread:$0]  %s34_s14, 256, %s36_s17, [#allocation4], %s105_s11, %s105_s11, %s106_s12  }
   0xa   :  { %102 = dma.done.wait [#allocation4], 256  }
   0xb   :  { %103 = vsyncadd [#allocation4], 4294967040 }
   0xc   :  { %46 = vsyncpa [#allocation3], 1 }
   0xd   :  { %47 = vsyncpa [#allocation4], 1 }

</bundles_post_ra>
